<compile_context>
chip_gen: v7x
topology: tpu7x:2x2x1
jax: 0.10.0
libtpu: 0.0.40
codegen_flags: <defaults>
</compile_context>

<pallas_src>
import jax
import jax.numpy as jnp
from jax.experimental import pallas as pl
from jax.experimental.pallas import tpu as pltpu


def _round_up(n, m):
    return ((n + m - 1) // m) * m


def mlp_kernel(x_ref, w1_ref, b1_ref, w2_ref, b2_ref, o_ref):
    # dropout (eval mode) == identity.
    # Cast to the weight dtype (bf16 by default) only at the MXU inputs.
    x = x_ref[...].astype(w1_ref.dtype)
    # linear1 (MXU, f32 accumulate) + bias + relu in f32 on the VPU.
    h = jnp.dot(x, w1_ref[...], preferred_element_type=jnp.float32)
    h = jnp.maximum(h + b1_ref[...], 0.0)
    # linear2 (MXU, f32 accumulate) + bias.
    out = jnp.dot(h.astype(w2_ref.dtype), w2_ref[...],
                  preferred_element_type=jnp.float32) + b2_ref[...]
    o_ref[...] = out.astype(o_ref.dtype)


def prepare_params(w1, b1, w2, b2, *, use_bf16=True):
    """One-time (init-path) weight prep: lane-dense padding + optional bf16 cast.

    w1:(D_in, H)  b1:(1, H)  w2:(H, D_out)  b2:(1, D_out)
    D_in is NOT padded (the x block keeps the full feature dim).
    """
    d_in, h = w1.shape
    h2, d_out = w2.shape
    assert h == h2
    h_p = _round_up(h, 128)        # 200 -> 256
    d_out_p = _round_up(d_out, 128)  # 10  -> 128

    mm_dtype = jnp.bfloat16 if use_bf16 else jnp.float32

    w1_p = jnp.zeros((d_in, h_p), mm_dtype).at[:, :h].set(w1.astype(mm_dtype))
    b1_p = jnp.zeros((1, h_p), jnp.float32).at[:, :h].set(
        b1.reshape(1, h).astype(jnp.float32))
    w2_p = jnp.zeros((h_p, d_out_p), mm_dtype).at[:h, :d_out].set(w2.astype(mm_dtype))
    b2_p = jnp.zeros((1, d_out_p), jnp.float32).at[:, :d_out].set(
        b2.reshape(1, d_out).astype(jnp.float32))
    return (w1_p, b1_p, w2_p, b2_p, d_out)


def mlp_forward(x, params, *, block_m=1024, core_parallel=False):
    """x:(B, D_in) in any float dtype; params from prepare_params()."""
    w1_p, b1_p, w2_p, b2_p, d_out = params
    B, d_in = x.shape
    assert d_in == w1_p.shape[0]
    h_p = w1_p.shape[1]
    d_out_p = w2_p.shape[1]

    # Batch tile: multiple of 8 sublanes; tail tile handled by Pallas masking.
    tm = min(_round_up(block_m, 8), _round_up(B, 8))
    grid = (pl.cdiv(B, tm),)

    # Advisory cost estimate so XLA schedules neighbors around the call.
    flops = 2 * B * (d_in * h_p + h_p * d_out_p)
    bytes_accessed = (
        B * d_in * jnp.dtype(x.dtype).itemsize          # x read
        + B * d_out_p * 4                               # logits write (f32)
        + w1_p.size * jnp.dtype(w1_p.dtype).itemsize    # resident weights
        + w2_p.size * jnp.dtype(w2_p.dtype).itemsize
        + (b1_p.size + b2_p.size) * 4)

    # On v7x, core_parallel=True explicitly shards batch tiles across both TCs.
    batch_sem = pltpu.CORE_PARALLEL if core_parallel else "parallel"

    out_p = pl.pallas_call(
        mlp_kernel,
        out_shape=jax.ShapeDtypeStruct((B, d_out_p), jnp.float32),
        grid=grid,
        in_specs=[
            pl.BlockSpec((tm, d_in), lambda i: (i, 0)),      # x tile (pipelined)
            pl.BlockSpec((d_in, h_p), lambda i: (0, 0)),     # W1 (VMEM-resident)
            pl.BlockSpec((1, h_p), lambda i: (0, 0)),        # b1 (VMEM-resident)
            pl.BlockSpec((h_p, d_out_p), lambda i: (0, 0)),  # W2 (VMEM-resident)
            pl.BlockSpec((1, d_out_p), lambda i: (0, 0)),    # b2 (VMEM-resident)
        ],
        out_specs=pl.BlockSpec((tm, d_out_p), lambda i: (i, 0)),
        compiler_params=pltpu.CompilerParams(
            dimension_semantics=(batch_sem,),
        ),
        cost_estimate=pl.CostEstimate(
            flops=flops, transcendentals=0, bytes_accessed=bytes_accessed),
    )(x, w1_p, b1_p, w2_p, b2_p)

    # Slice the lane-padded logits back to the real class count.
    return out_p[:, :d_out]


def init_params(key, input_dim, hidden_dim, output_dim):
    """Deterministic init mimicking nn.Linear default (U(-1/sqrt(fan_in), +))."""
    k1, k2, k3, k4 = jax.random.split(key, 4)
    bound1 = 1.0 / jnp.sqrt(input_dim)
    bound2 = 1.0 / jnp.sqrt(hidden_dim)
    w1 = jax.random.uniform(k1, (input_dim, hidden_dim), jnp.float32, -bound1, bound1)
    b1 = jax.random.uniform(k2, (1, hidden_dim), jnp.float32, -bound1, bound1)
    w2 = jax.random.uniform(k3, (hidden_dim, output_dim), jnp.float32, -bound2, bound2)
    b2 = jax.random.uniform(k4, (1, output_dim), jnp.float32, -bound2, bound2)
    return w1, b1, w2, b2


if __name__ == "__main__":
    key = jax.random.PRNGKey(0)
    k_x, k_p = jax.random.split(key)

    batch = 8
    input_dim = 64      # feature dim of x_train
    hidden_dim = 200    # fixed in MLPClassifier.initialize
    output_dim = 10     # number of classes

    x = jax.random.normal(k_x, (batch, input_dim), jnp.float32)
    w1, b1, w2, b2 = init_params(k_p, input_dim, hidden_dim, output_dim)

    # reference in plain JAX (dropout in eval mode == identity)
    ref = jnp.maximum(x @ w1 + b1, 0.0) @ w2 + b2

    # f32-weight path: exact match vs reference
    params_f32 = prepare_params(w1, b1, w2, b2, use_bf16=False)
    out = jax.block_until_ready(mlp_forward(x, params_f32))
    assert out.shape == (batch, output_dim)
    assert jnp.allclose(out, ref, atol=1e-5, rtol=1e-5)

    # default bf16-MXU path (f32 accumulate): looser tolerance, fine for argmax
    params_bf16 = prepare_params(w1, b1, w2, b2)  # use_bf16=True default
    out_bf16 = jax.block_until_ready(mlp_forward(x, params_bf16))
    assert out_bf16.shape == (batch, output_dim)
    assert jnp.allclose(out_bf16, ref, atol=5e-2, rtol=5e-2)

    print("KERNEL_OK")
</pallas_src>

<mosaic_0001>
module attributes {stable_mosaic.version = 11 : i64} {
  func.func @mlp_kernel(%arg0: i32, %arg1: memref<8x64xf32, #tpu.memory_space<vmem>>, %arg2: memref<64x256xf32, #tpu.memory_space<vmem>>, %arg3: memref<1x256xf32, #tpu.memory_space<vmem>>, %arg4: memref<256x128xf32, #tpu.memory_space<vmem>>, %arg5: memref<1x128xf32, #tpu.memory_space<vmem>>, %arg6: memref<8x128xf32, #tpu.memory_space<vmem>>) attributes {dimension_semantics = [#tpu.dimension_semantics<parallel>], iteration_bounds = array<i64: 1>, scalar_prefetch = 0 : i64, scratch_operands = 0 : i64, tpu.core_type = #tpu.core_type<tc>, window_params = [{transform_indices = @transform_0, window_bounds = array<i64: 8, 64>}, {pipeline_mode = #tpu.pipeline_mode<synchronous>, transform_indices = @transform_1, window_bounds = array<i64: 64, 256>}, {pipeline_mode = #tpu.pipeline_mode<synchronous>, transform_indices = @transform_2, window_bounds = array<i64: 1, 256>}, {pipeline_mode = #tpu.pipeline_mode<synchronous>, transform_indices = @transform_3, window_bounds = array<i64: 256, 128>}, {pipeline_mode = #tpu.pipeline_mode<synchronous>, transform_indices = @transform_4, window_bounds = array<i64: 1, 128>}, {transform_indices = @transform_5, window_bounds = array<i64: 8, 128>}]} {
    %c0 = arith.constant 0 : index
    %c0_0 = arith.constant 0 : index
    %0 = vector.load %arg1[%c0, %c0_0] : memref<8x64xf32, #tpu.memory_space<vmem>>, vector<8x64xf32>
    %c0_1 = arith.constant 0 : index
    %c0_2 = arith.constant 0 : index
    %1 = vector.load %arg2[%c0_1, %c0_2] : memref<64x256xf32, #tpu.memory_space<vmem>>, vector<64x256xf32>
    %cst = arith.constant dense<0.000000e+00> : vector<8x256xf32>
    %2 = tpu.matmul %0, %1, %cst {dimension_numbers = #tpu.dot_dimension_numbers<[1], [0], [0], [1], [0, 0, 1, 1], [], []>} : vector<8x64xf32>, vector<64x256xf32>, vector<8x256xf32> -> vector<8x256xf32>
    %c0_3 = arith.constant 0 : index
    %c0_4 = arith.constant 0 : index
    %3 = vector.load %arg3[%c0_3, %c0_4] : memref<1x256xf32, #tpu.memory_space<vmem>>, vector<1x256xf32>
    %4 = vector.broadcast %3 : vector<1x256xf32> to vector<8x256xf32>
    %5 = arith.addf %2, %4 : vector<8x256xf32>
    %cst_5 = arith.constant 0.000000e+00 : f32
    %6 = vector.broadcast %cst_5 : f32 to vector<8x256xf32>
    %7 = arith.maximumf %5, %6 : vector<8x256xf32>
    %c0_6 = arith.constant 0 : index
    %c0_7 = arith.constant 0 : index
    %8 = vector.load %arg4[%c0_6, %c0_7] : memref<256x128xf32, #tpu.memory_space<vmem>>, vector<256x128xf32>
    %cst_8 = arith.constant dense<0.000000e+00> : vector<8x128xf32>
    %9 = tpu.matmul %7, %8, %cst_8 {dimension_numbers = #tpu.dot_dimension_numbers<[1], [0], [0], [1], [0, 0, 1, 1], [], []>} : vector<8x256xf32>, vector<256x128xf32>, vector<8x128xf32> -> vector<8x128xf32>
    %c0_9 = arith.constant 0 : index
    %c0_10 = arith.constant 0 : index
    %10 = vector.load %arg5[%c0_9, %c0_10] : memref<1x128xf32, #tpu.memory_space<vmem>>, vector<1x128xf32>
    %11 = vector.broadcast %10 : vector<1x128xf32> to vector<8x128xf32>
    %12 = arith.addf %9, %11 : vector<8x128xf32>
    %c0_11 = arith.constant 0 : index
    %c0_12 = arith.constant 0 : index
    %13 = vector.load %arg6[%c0_11, %c0_12] : memref<8x128xf32, #tpu.memory_space<vmem>>, vector<8x128xf32>
    tpu.vector_store %arg6[%c0_11, %c0_12], %12 {strides = array<i32>} : memref<8x128xf32, #tpu.memory_space<vmem>>, vector<8x128xf32>,
    return
  }
  func.func @transform_0(%arg0: i32) -> (i32, i32) {
    %c0_i32 = arith.constant 0 : i32
    %c0_i32_0 = arith.constant 0 : i32
    return %arg0, %c0_i32 : i32, i32
  }
  func.func @transform_1(%arg0: i32) -> (i32, i32) {
    %c0_i32 = arith.constant 0 : i32
    %c0_i32_0 = arith.constant 0 : i32
    %c0_i32_1 = arith.constant 0 : i32
    return %c0_i32, %c0_i32_0 : i32, i32
  }
  func.func @transform_2(%arg0: i32) -> (i32, i32) {
    %c0_i32 = arith.constant 0 : i32
    %c0_i32_0 = arith.constant 0 : i32
    %c0_i32_1 = arith.constant 0 : i32
    return %c0_i32, %c0_i32_0 : i32, i32
  }
  func.func @transform_3(%arg0: i32) -> (i32, i32) {
    %c0_i32 = arith.constant 0 : i32
    %c0_i32_0 = arith.constant 0 : i32
    %c0_i32_1 = arith.constant 0 : i32
    return %c0_i32, %c0_i32_0 : i32, i32
  }
  func.func @transform_4(%arg0: i32) -> (i32, i32) {
    %c0_i32 = arith.constant 0 : i32
    %c0_i32_0 = arith.constant 0 : i32
    %c0_i32_1 = arith.constant 0 : i32
    return %c0_i32, %c0_i32_0 : i32, i32
  }
  func.func @transform_5(%arg0: i32) -> (i32, i32) {
    %c0_i32 = arith.constant 0 : i32
    %c0_i32_0 = arith.constant 0 : i32
    return %arg0, %c0_i32 : i32, i32
  }
}

</mosaic_0001>

<bundles_post_ra>
// kernel: tpu_custom_call.1
= control target key start
LH: loop header
LB: loop body
LE: loop exit
PB: predicated region body
PF: predicated region fallthrough
CT: control target
= control target key end

     0   :  { %10 = vsyncpa [#allocation3], 0  ;;  %s573_s0 = inlined_call_operand.hbm [shape: f32[8,64], index: 0, kind: input, shape index: {}]   ;;  %s574_s1 = inlined_call_operand.hbm [shape: f32[64,256], index: 1, kind: input, shape index: {}]   ;;  %s575_s2 = inlined_call_operand.vmem [shape: f32[1,256], index: 2, kind: input, shape index: {}]   ;;  %s576_s3 = inlined_call_operand.hbm [shape: f32[256,128], index: 3, kind: input, shape index: {}]   ;;  %s577_s4 = inlined_call_operand.vmem [shape: f32[1,128], index: 4, kind: input, shape index: {}]   ;;  %s578_s5 = inlined_call_operand.hbm [shape: f32[8,128], index: 5, kind: output, shape index: {}]  }
   0x1   :  { %11 = vsyncpa [#allocation6], 0 }
   0x2   :  { %12 = vsyncpa [#allocation4], 0  ;;  %s480_s18 = smov [#allocation5]   ;;  %s386_s22 = scalar_lea.hbm %s574_s1, 2048 }
   0x3   :  { %s28_s19 = sshll.u32 %s480_s18, 4  ;;  %p387_p0 = scmp.ne.s32.totalorder %s574_s1, %s386_s22  ;;  %s29_s19 = int_to_ptr.vmem [resolvable:$true] %s28_s19 }
   0x4   :  { %p390_p1 = scmp.lt.u32.totalorder %s386_s22, %s574_s1 }
   0x6   :  { %p392_p2 = pnand %p390_p1, %p387_p0 }
   0x8   :  { %395 = shalt.err (!%p392_p2)
}
   0x9   :  { %s396_s27 = scalar_lea.vmem %s29_s19, 2048  ;;  %p401_p4 = scmp.lt.s32.totalorder %s29_s19, %s29_s19 }
   0xa   :  { %p397_p3 = scmp.ne.s32.totalorder %s29_s19, %s396_s27  ;;  %p402_p5 = scmp.lt.s32.totalorder %s396_s27, %s396_s27 }
   0xc   :  { %p403_p6 = por %p402_p5, %p401_p4 }
   0xe   :  { %p404_p7 = pnand %p403_p6, %p397_p3 }
  0x10   :  { %407 = shalt.err (!%p404_p7)
}
  0x11   :  { %s481_s28 = smov 256   ;;  %s482_s29 = smov 16  }
  0x12   :  { %34 = dma.hbm_to_vmem [thread:$0]  %s574_s1, 2048, %s29_s19, [#allocation6], %s481_s28, %s481_s28, %s482_s29  }
  0x13   :  { %s483_s7 = smov [#allocation2]   ;;  %s484_s9 = smov [#allocation7]  }
  0x14   :  { %s19_s8 = sshll.u32 %s483_s7, 4  ;;  %s42_s10 = sshll.u32 %s484_s9, 4  ;;  %s20_s8 = int_to_ptr.vmem [resolvable:$true] %s19_s8  ;;  %s43_s10 = int_to_ptr.vmem [resolvable:$true] %s42_s10 }
  0x15   :  { %s408_s13 = scalar_lea.hbm %s573_s0, 128 }
  0x16   :  { %p409_p8 = scmp.ne.s32.totalorder %s573_s0, %s408_s13  ;;  %p412_p9 = scmp.lt.u32.totalorder %s408_s13, %s573_s0 }
  0x18   :  { %p414_p10 = pnand %p412_p9, %p409_p8 }
  0x1a   :  { %417 = shalt.err (!%p414_p10)
}
  0x1b   :  { %s418_s1 = scalar_lea.vmem %s20_s8, 128  ;;  %p423_p12 = scmp.lt.s32.totalorder %s20_s8, %s20_s8 }
  0x1c   :  { %p419_p11 = scmp.ne.s32.totalorder %s20_s8, %s418_s1  ;;  %p424_p13 = scmp.lt.s32.totalorder %s418_s1, %s418_s1 }
  0x1e   :  { %p425_p0 = por %p424_p13, %p423_p12 }
  0x20   :  { %p426_p1 = pnand %p425_p0, %p419_p11 }
  0x22   :  { %429 = shalt.err (!%p426_p1)
}
  0x23   :  { %22 = dma.hbm_to_vmem [thread:$0]  %s573_s0, 128, %s20_s8, [#allocation3]  }
  0x24   :  { %s430_s22 = scalar_lea.hbm %s576_s3, 4096 }
  0x25   :  { %p431_p2 = scmp.ne.s32.totalorder %s576_s3, %s430_s22  ;;  %p434_p3 = scmp.lt.u32.totalorder %s430_s22, %s576_s3 }
  0x27   :  { %p436_p4 = pnand %p434_p3, %p431_p2 }
  0x29   :  { %439 = shalt.err (!%p436_p4)
}
  0x2a   :  { %s440_s27 = scalar_lea.vmem %s43_s10, 4096  ;;  %p445_p6 = scmp.lt.s32.totalorder %s43_s10, %s43_s10 }
  0x2b   :  { %p441_p5 = scmp.ne.s32.totalorder %s43_s10, %s440_s27  ;;  %p446_p7 = scmp.lt.s32.totalorder %s440_s27, %s440_s27 }
  0x2d   :  { %p447_p8 = por %p446_p7, %p445_p6 }
  0x2f   :  { %p448_p9 = pnand %p447_p8, %p441_p5 }
  0x31   :  { %451 = shalt.err (!%p448_p9)
}
  0x32   :  { %s485_s0 = smov 128   ;;  %s486_s28 = smov 8  }
  0x33   :  { %48 = dma.hbm_to_vmem [thread:$0]  %s576_s3, 4096, %s43_s10, [#allocation6], %s485_s0, %s485_s0, %s486_s28  }
  0x34   :  { %474 = dma.done.wait [#allocation3], 128  }
  0x35   :  { %475 = vsyncadd [#allocation3], 4294967168 }
  0x36   :  { %476 = dma.done.wait [#allocation6], 6144  }
  0x37   :  { %477 = vsyncadd [#allocation6], 4294961152  ;;  %v487_v0 = vmov 0.0   ;;  %v62_v1 = vld [vmem:[#allocation5 + $0x8] sm:$0xff]  ;;  %v64_v2 = vld [vmem:[#allocation5 + $0x18] sm:$0xff]  ;;  %vm89_vm0 = vcmask 523264  }
  0x38   :  { %157 = vmatprep.mubr.f32.mxu0 %v487_v0  ;;  %v61_v3 = vld [vmem:[#allocation5] sm:$0xff]  ;;  %v329_v4 = vpack.c.bf16 %v64_v2, %v62_v1  ;;  %v63_v5 = vld [vmem:[#allocation5 + $0x10] sm:$0xff]  ;;  %v66_v6 = vld [vmem:[#allocation5 + $0x28] sm:$0xff]  ;;  %s488_s9 = smov [#allocation8]  }
  0x39   :  { %v68_v7 = vld [vmem:[#allocation5 + $0x38] sm:$0xff]  ;;  %v331_v8 = vpack.c.bf16 %v63_v5, %v61_v3  ;;  %v65_v10 = vld [vmem:[#allocation5 + $0x20] sm:$0xff]  ;;  %v67_v11 = vld [vmem:[#allocation5 + $0x30] sm:$0xff]  ;;  %s282_s10 = sshll.u32 %s488_s9, 4  ;;  %s283_s10 = int_to_ptr.vmem [resolvable:$true] %s282_s10 }
  0x3a   :  { %v333_v9 = vpack.c.bf16 %v68_v7, %v66_v6  ;;  %v70_v12 = vld [vmem:[#allocation5 + $0x48] sm:$0xff]  ;;  %330 = vmatprep.subr.bf16.mxu0 %v329_v4  ;;  %v72_v13 = vld [vmem:[#allocation5 + $0x58] sm:$0xff]  ;;  %v335_v14 = vpack.c.bf16 %v67_v11, %v65_v10  ;;  %v69_v15 = vld [vmem:[#allocation5 + $0x40] sm:$0xff]  ;;  %v79_v10 = vlaneseq  ;;  %p457_p11 = scmp.lt.s32.totalorder %s283_s10, %s283_s10 }
  0x3b   :  { %332 = vmatpush1.bf16.msra.mxu0 %v331_v8  ;;  %v71_v16 = vld [vmem:[#allocation5 + $0x50] sm:$0xff]  ;;  %v337_v17 = vpack.c.bf16 %v72_v13, %v70_v12  ;;  %v74_v18 = vld [vmem:[#allocation5 + $0x68] sm:$0xff]  ;;  %v76_v19 = vld [vmem:[#allocation5 + $0x78] sm:$0xff] }
  0x3c   :  { %334 = vmatprep.subr.bf16.mxu0 %v333_v9  ;;  %v182_v20 = vld [vmem:[#allocation7 + $0x80] sm:$0xff]  ;;  %v183_v21 = vld [vmem:[#allocation7 + $0x88] sm:$0xff]  ;;  %v184_v26 = vld [vmem:[#allocation7 + $0x90] sm:$0xff]  ;;  %v339_v29 = vpack.c.bf16 %v71_v16, %v69_v15  ;;  %v341_v34 = vpack.c.bf16 %v76_v19, %v74_v18  ;;  %v80_v11 = vshrl.u32 %v79_v10, 7 }
  0x3d   :  { %v166_v22 = vld [vmem:[#allocation7] sm:$0xff]  ;;  %v167_v23 = vld [vmem:[#allocation7 + $0x8] sm:$0xff]  ;;  %v345_v24 = vpack.c.bf16 %v183_v21, %v182_v20  ;;  %v185_v27 = vld [vmem:[#allocation7 + $0x98] sm:$0xff] }
  0x3e   :  { %v347_v25 = vpack.c.bf16 %v167_v23, %v166_v22  ;;  %v168_v28 = vld [vmem:[#allocation7 + $0x10] sm:$0xff]  ;;  %v349_v30 = vpack.c.bf16 %v185_v27, %v184_v26  ;;  %v169_v31 = vld [vmem:[#allocation7 + $0x18] sm:$0xff]  ;;  %v186_v32 = vld [vmem:[#allocation7 + $0xa0] sm:$0xff]  ;;  %v81_v12 = vsub.s32 0, %v80_v11 }
  0x3f   :  { %336 = vmatpush1.bf16.msra.mxu0 %v335_v14  ;;  %v187_v33 = vld [vmem:[#allocation7 + $0xa8] sm:$0xff]  ;;  %v73_v35 = vld [vmem:[#allocation5 + $0x60] sm:$0xff]  ;;  %v75_v36 = vld [vmem:[#allocation5 + $0x70] sm:$0xff]  ;;  %346 = vmatprep.subr.bf16.mxu1 %v345_v24  ;;  %v351_v37 = vpack.c.bf16 %v169_v31, %v168_v28  ;;  %v85_v14 = vsub.s32 1, %v80_v11 }
  0x40   :  { %338 = vmatprep.subr.bf16.mxu0 %v337_v17  ;;  %348 = vmatpush3.bf16.msra.mxu1 %v347_v25  ;;  %v353_v38 = vpack.c.bf16 %v187_v33, %v186_v32  ;;  %v170_v39 = vld [vmem:[#allocation7 + $0x20] sm:$0xff]  ;;  %v171_v40 = vld [vmem:[#allocation7 + $0x28] sm:$0xff]  ;;  %v343_v41 = vpack.c.bf16 %v75_v36, %v73_v35  ;;  %v188_v42 = vld [vmem:[#allocation7 + $0xb0] sm:$0xff] }
  0x41   :  { %350 = vmatprep.subr.bf16.mxu1 %v349_v30  ;;  %v189_v43 = vld [vmem:[#allocation7 + $0xb8] sm:$0xff]  ;;  %v355_v44 = vpack.c.bf16 %v171_v40, %v170_v39  ;;  %v172_v46 = vld [vmem:[#allocation7 + $0x30] sm:$0xff]  ;;  %v190_v49 = vld [vmem:[#allocation7 + $0xc0] sm:$0xff] }
  0x42   :  { %v357_v45 = vpack.c.bf16 %v189_v43, %v188_v42  ;;  %v173_v47 = vld [vmem:[#allocation7 + $0x38] sm:$0xff]  ;;  %v191_v50 = vld [vmem:[#allocation7 + $0xc8] sm:$0xff]  ;;  %v174_v53 = vld [vmem:[#allocation7 + $0x40] sm:$0xff] }
  0x43   :  { %340 = vmatpush1.bf16.msra.mxu0 %v339_v29  ;;  %v60_v48 = vld [vmem:[#allocation2] sm:$0xff]  ;;  %v359_v51 = vpack.c.bf16 %v173_v47, %v172_v46  ;;  %v361_v52 = vpack.c.bf16 %v191_v50, %v190_v49  ;;  %v175_v54 = vld [vmem:[#allocation7 + $0x48] sm:$0xff]  ;;  %v192_v55 = vld [vmem:[#allocation7 + $0xd0] sm:$0xff] }
  0x44   :  { %342 = vmatprep.subr.bf16.mxu0 %v341_v34  ;;  %352 = vmatpush3.bf16.msra.mxu1 %v351_v37  ;;  %v193_v56 = vld [vmem:[#allocation7 + $0xd8] sm:$0xff]  ;;  %v363_v57 = vpack.c.bf16 %v175_v54, %v174_v53  ;;  %v176_v59 = vld [vmem:[#allocation7 + $0x50] sm:$0xff]  ;;  %v194_v61 = vld [vmem:[#allocation7 + $0xe0] sm:$0xff] }
  0x45   :  { %354 = vmatprep.subr.bf16.mxu1 %v353_v38  ;;  %v365_v58 = vpack.c.bf16 %v193_v56, %v192_v55  ;;  %v177_v60 = vld [vmem:[#allocation7 + $0x58] sm:$0xff]  ;;  %v195_v62 = vld [vmem:[#allocation7 + $0xe8] sm:$0xff]  ;;  %v178_v1 = vld [vmem:[#allocation7 + $0x60] sm:$0xff] }
  0x46   :  { %v367_v63 = vpack.c.bf16 %v177_v60, %v176_v59  ;;  %v369_v0 = vpack.c.bf16 %v195_v62, %v194_v61  ;;  %v179_v2 = vld [vmem:[#allocation7 + $0x68] sm:$0xff]  ;;  %v196_v4 = vld [vmem:[#allocation7 + $0xf0] sm:$0xff]  ;;  %v197_v5 = vld [vmem:[#allocation7 + $0xf8] sm:$0xff] }
  0x47   :  { %344 = vmatpush1.bf16.msra.mxu0 %v343_v41  ;;  %v371_v3 = vpack.c.bf16 %v179_v2, %v178_v1  ;;  %v373_v6 = vpack.c.bf16 %v197_v5, %v196_v4  ;;  %v180_v7 = vld [vmem:[#allocation7 + $0x70] sm:$0xff]  ;;  %v181_v8 = vld [vmem:[#allocation7 + $0x78] sm:$0xff] }
  0x48   :  { %356 = vmatpush3.bf16.msra.mxu1 %v355_v44  ;;  %v375_v9 = vpack.c.bf16 %v181_v8, %v180_v7  ;;  %v77_v13 = vld [vmem:[%s575_s2] sm:$0x3]  ;;  %s452_s2 = scalar_lea.vmem %s283_s10, 128 }
  0x49   :  { %358 = vmatprep.subr.bf16.mxu1 %v357_v45  ;;  %v82_v15 = vrot.slane %v77_v13, %v81_v12  ;;  %v86_v16 = vrot.slane %v77_v13, %v85_v14  ;;  %v293_v24 = vld [vmem:[%s577_s4] ss:$0 sm:$0xff]  ;;  %p453_p10 = scmp.ne.s32.totalorder %s283_s10, %s452_s2  ;;  %p458_p12 = scmp.lt.s32.totalorder %s452_s2, %s452_s2 }
  0x4a   :  { %292 = vmatmul.mubr.msk.f32.vlgmr.msra.gmra.mrb[0].mxu0 %vm89_vm0, %v60_v48 }
  0x4b   :  { %p459_p13 = por %p458_p12, %p457_p11 }
  0x4c   :  { %360 = vmatpush3.bf16.msra.mxu1 %v359_v51 }
  0x4d   :  { %362 = vmatprep.subr.bf16.mxu1 %v361_v52  ;;  %p460_p0 = pnand %p459_p13, %p453_p10 }
  0x50   :  { %364 = vmatpush3.bf16.msra.mxu1 %v363_v57 }
  0x51   :  { %366 = vmatprep.subr.bf16.mxu1 %v365_v58 }
  0x54   :  { %368 = vmatpush3.bf16.msra.mxu1 %v367_v63 }
  0x55   :  { %370 = vmatprep.subr.bf16.mxu1 %v369_v0 }
  0x58   :  { %372 = vmatpush3.bf16.msra.mxu1 %v371_v3 }
  0x59   :  { %374 = vmatprep.subr.bf16.mxu1 %v373_v6 }
  0x5c   :  { %376 = vmatpush3.bf16.msra.mxu1 %v375_v9 }
 0x11d   :  { %v159_v17 = vpop.f32.mrb[0].mxu0 }
 0x11e   :  { %v160_v18 = vadd.f32 %v159_v17, %v82_v15  ;;  %v161_v19 = vpop.f32.mrb[1].mxu0 }
 0x11f   :  { %v162_v20 = vadd.f32 %v161_v19, %v86_v16 }
 0x120   :  { %v164_v22 = vmax.f32 %v160_v18, 0.0 }
 0x121   :  { %v165_v21 = vmax.f32 %v162_v20, 0.0 }
 0x123   :  { %269 = vmatprep.mubr.f32.mxu1 %v165_v21 }
 0x124   :  { %270 = vmatmul.mubr.f32.vlgmr.msra.gmra.mrb[0].mxu1 %v164_v22 }
 0x1f7   :  { %v326_v23 = vpop.f32.mrb[0].mxu1 }
 0x1f8   :  { %v327_v25 = vpop.f32.mrb[1].mxu1 }
 0x1f9   :  { %v328_v26 = vadd.f32 %v327_v25, %v326_v23 }
 0x1fb   :  { %v272_v27 = vadd.f32 %v328_v26, %v293_v24 }
 0x1fd   :  { %275 = vst [vmem:[#allocation8] sm:$0xff] %v272_v27 }
 0x1fe   :  { %463 = shalt.err (!%p460_p0)
}
 0x1ff   :  { %s464_s13 = scalar_lea.hbm %s578_s5, 128 }
 0x200   :  { %p465_p1 = scmp.ne.s32.totalorder %s578_s5, %s464_s13  ;;  %p468_p2 = scmp.lt.u32.totalorder %s464_s13, %s578_s5 }
 0x202   :  { %p470_p3 = pnand %p468_p2, %p465_p1 }
 0x204   :  { %473 = shalt.err (!%p470_p3)
}
 0x205   :  { %285 = dma.vmem_to_hbm [thread:$0]  %s283_s10, 128, %s578_s5, [#allocation4]  }
 0x206   :  { %478 = dma.done.wait [#allocation4], 128  }
 0x207   :  { %479 = vsyncadd [#allocation4], 4294967168 }
 0x208   :  { %289 = vsyncpa [#allocation3], 1 }
 0x209   :  { %290 = vsyncpa [#allocation6], 1 }
 0x20a   :  { %291 = vsyncpa [#allocation4], 1 }

</bundles_post_ra>
